<compile_context>
chip_gen: v6e
topology: v6e:2x2x1
jax: 0.10.0
libtpu: 0.0.40
codegen_flags: <defaults>
</compile_context>

<pallas_src>
import numpy as np
import jax
import jax.numpy as jnp
from jax.experimental import pallas as pl
from jax.experimental.pallas import tpu as pltpu


def _leaky_relu(x, negative_slope=0.2):
    return jnp.where(x > 0, x, negative_slope * x)


def discriminator_kernel(x_ref, w1_ref, b1_ref, w2_ref, b2_ref, w3_ref, b3_ref,
                         o_ref):
    # Layer 1: Linear(D -> 512) + LeakyReLU(0.2).  bf16 in, f32 accumulate.
    h = jnp.dot(x_ref[...], w1_ref[...], preferred_element_type=jnp.float32)
    h = _leaky_relu(h + b1_ref[...])

    # Layer 2: Linear(512 -> 256) + LeakyReLU(0.2).
    h = jnp.dot(h.astype(jnp.bfloat16), w2_ref[...],
                preferred_element_type=jnp.float32)
    h = _leaky_relu(h + b2_ref[...])

    # Layer 3: Linear(256 -> 1) as VPU multiply + lane reduction (N=1 matmul
    # would waste the MXU); bias scalar comes from SMEM.
    z = jnp.sum(h * w3_ref[...], axis=-1, keepdims=True) + b3_ref[0, 0]

    # Sigmoid: exp on the EUP, approx reciprocal also on the EUP.
    o_ref[...] = pl.reciprocal(1.0 + jnp.exp(-z), approx=True)


def discriminator_forward(img, params, tile_b=None):
    """img: [B, C, H, W] float32.  Returns validity [B, 1] float32."""
    w1, b1, w2, b2, w3, b3 = params
    B = img.shape[0]
    D = int(np.prod(img.shape[1:]))
    x = img.reshape(B, D)  # same as torch .view(B, -1)

    if tile_b is None:
        tile_b = B if B <= 128 else 128
    grid = (pl.cdiv(B, tile_b),)

    # bf16 operands for the MXU dots (halves HBM traffic, native MXU dtype);
    # biases and the tiny layer-3 weight row stay f32 (VPU math).
    x_bf = x.astype(jnp.bfloat16)
    w1_bf = w1.astype(jnp.bfloat16)
    w2_bf = w2.astype(jnp.bfloat16)
    w3_row = w3.T              # (1, 256) f32 for the VPU reduce
    b3_s = b3.reshape(1, 1)    # scalar -> SMEM

    def resident(shape):
        return pl.BlockSpec(shape, lambda i: (0,) * len(shape))

    return pl.pallas_call(
        discriminator_kernel,
        out_shape=jax.ShapeDtypeStruct((B, 1), jnp.float32),
        grid=grid,
        in_specs=[
            pl.BlockSpec((tile_b, D), lambda i: (i, 0)),   # x, tiled over batch
            resident(w1_bf.shape),                          # W1 (D, 512)   bf16
            resident(b1.shape),                             # b1 (1, 512)   f32
            resident(w2_bf.shape),                          # W2 (512, 256) bf16
            resident(b2.shape),                             # b2 (1, 256)   f32
            resident(w3_row.shape),                         # W3 row (1, 256) f32
            pl.BlockSpec(memory_space=pltpu.MemorySpace.SMEM),  # b3 (1, 1)
        ],
        out_specs=pl.BlockSpec((tile_b, 1), lambda i: (i, 0)),
        compiler_params=pltpu.CompilerParams(
            dimension_semantics=("parallel",),
            vmem_limit_bytes=16 << 20,
        ),
    )(x_bf, w1_bf, b1, w2_bf, b2, w3_row, b3_s)


def init_params(key, in_features, hidden1=512, hidden2=256, out_features=1):
    """Deterministic PyTorch-style (kaiming-uniform-ish) init for the 3 Linears."""
    def linear(key, fan_in, fan_out):
        kw, kb = jax.random.split(key)
        bound = 1.0 / np.sqrt(fan_in)
        w = jax.random.uniform(kw, (fan_in, fan_out), jnp.float32, -bound, bound)
        b = jax.random.uniform(kb, (1, fan_out), jnp.float32, -bound, bound)
        return w, b

    k1, k2, k3 = jax.random.split(key, 3)
    w1, b1 = linear(k1, in_features, hidden1)
    w2, b2 = linear(k2, hidden1, hidden2)
    w3, b3 = linear(k3, hidden2, out_features)
    return (w1, b1, w2, b2, w3, b3)


def reference_forward(img, params):
    """Pure-JAX (f32) reference of the PyTorch forward, for correctness checking."""
    w1, b1, w2, b2, w3, b3 = params
    x = img.reshape(img.shape[0], -1)
    h = _leaky_relu(x @ w1 + b1)
    h = _leaky_relu(h @ w2 + b2)
    z = h @ w3 + b3
    return jax.nn.sigmoid(z)


if __name__ == "__main__":
    # Module defaults: channels=1, img_size=28 -> in_features = 784.
    channels, img_size, batch = 1, 28, 2
    key = jax.random.PRNGKey(0)
    k_params, k_img, k_img_big = jax.random.split(key, 3)

    params = init_params(k_params, channels * img_size * img_size)

    # Small benchmark shape (B=2): single grid step.
    img = jax.random.normal(k_img, (batch, channels, img_size, img_size),
                            dtype=jnp.float32)
    out = jax.block_until_ready(discriminator_forward(img, params))
    ref = reference_forward(img, params)
    assert out.shape == (batch, 1), out.shape
    # bf16 matmul operands -> relaxed tolerance vs the f32 reference.
    np.testing.assert_allclose(np.asarray(out), np.asarray(ref),
                               rtol=2e-2, atol=2e-2)

    # Larger batch: exercises the batch grid (2 tiles of 128) + pipelining.
    img_big = jax.random.normal(k_img_big, (256, channels, img_size, img_size),
                                dtype=jnp.float32)
    out_big = jax.block_until_ready(discriminator_forward(img_big, params))
    ref_big = reference_forward(img_big, params)
    np.testing.assert_allclose(np.asarray(out_big), np.asarray(ref_big),
                               rtol=2e-2, atol=2e-2)

    print("KERNEL_OK")
</pallas_src>

<mosaic_0001>
module attributes {stable_mosaic.version = 11 : i64} {
  func.func @discriminator_kernel(%arg0: i32, %arg1: memref<2x784xbf16, #tpu.memory_space<vmem>>, %arg2: memref<784x512xbf16, #tpu.memory_space<vmem>>, %arg3: memref<1x512xf32, #tpu.memory_space<vmem>>, %arg4: memref<512x256xbf16, #tpu.memory_space<vmem>>, %arg5: memref<1x256xf32, #tpu.memory_space<vmem>>, %arg6: memref<1x256xf32, #tpu.memory_space<vmem>>, %arg7: memref<1x1xf32, #tpu.memory_space<smem>>, %arg8: memref<2x1xf32, #tpu.memory_space<vmem>>) attributes {dimension_semantics = [#tpu.dimension_semantics<parallel>], iteration_bounds = array<i64: 1>, scalar_prefetch = 0 : i64, scratch_operands = 0 : i64, tpu.core_type = #tpu.core_type<tc>, window_params = [{transform_indices = @transform_0, window_bounds = array<i64: 2, 784>}, {pipeline_mode = #tpu.pipeline_mode<synchronous>, transform_indices = @transform_1, window_bounds = array<i64: 784, 512>}, {pipeline_mode = #tpu.pipeline_mode<synchronous>, transform_indices = @transform_2, window_bounds = array<i64: 1, 512>}, {pipeline_mode = #tpu.pipeline_mode<synchronous>, transform_indices = @transform_3, window_bounds = array<i64: 512, 256>}, {pipeline_mode = #tpu.pipeline_mode<synchronous>, transform_indices = @transform_4, window_bounds = array<i64: 1, 256>}, {pipeline_mode = #tpu.pipeline_mode<synchronous>, transform_indices = @transform_5, window_bounds = array<i64: 1, 256>}, {transform_indices = @transform_6, window_bounds = array<i64: 1, 1>}, {transform_indices = @transform_7, window_bounds = array<i64: 2, 1>}]} {
    %c0 = arith.constant 0 : index
    %c0_0 = arith.constant 0 : index
    %0 = vector.load %arg1[%c0, %c0_0] : memref<2x784xbf16, #tpu.memory_space<vmem>>, vector<2x784xbf16>
    %c0_1 = arith.constant 0 : index
    %c0_2 = arith.constant 0 : index
    %1 = vector.load %arg2[%c0_1, %c0_2] : memref<784x512xbf16, #tpu.memory_space<vmem>>, vector<784x512xbf16>
    %cst = arith.constant dense<0.000000e+00> : vector<2x512xf32>
    %2 = tpu.matmul %0, %1, %cst {dimension_numbers = #tpu.dot_dimension_numbers<[1], [0], [0], [1], [0, 0, 1, 1], [], []>} : vector<2x784xbf16>, vector<784x512xbf16>, vector<2x512xf32> -> vector<2x512xf32>
    %c0_3 = arith.constant 0 : index
    %c0_4 = arith.constant 0 : index
    %3 = vector.load %arg3[%c0_3, %c0_4] : memref<1x512xf32, #tpu.memory_space<vmem>>, vector<1x512xf32>
    %4 = vector.broadcast %3 : vector<1x512xf32> to vector<2x512xf32>
    %5 = arith.addf %2, %4 : vector<2x512xf32>
    %cst_5 = arith.constant 0.000000e+00 : f32
    %6 = vector.broadcast %cst_5 : f32 to vector<2x512xf32>
    %7 = arith.cmpf ogt, %5, %6 : vector<2x512xf32>
    %cst_6 = arith.constant 2.000000e-01 : f32
    %8 = vector.broadcast %cst_6 : f32 to vector<2x512xf32>
    %9 = arith.mulf %8, %5 : vector<2x512xf32>
    %10 = arith.select %7, %5, %9 : vector<2x512xi1>, vector<2x512xf32>
    %11 = arith.truncf %10 : vector<2x512xf32> to vector<2x512xbf16>
    %c0_7 = arith.constant 0 : index
    %c0_8 = arith.constant 0 : index
    %12 = vector.load %arg4[%c0_7, %c0_8] : memref<512x256xbf16, #tpu.memory_space<vmem>>, vector<512x256xbf16>
    %cst_9 = arith.constant dense<0.000000e+00> : vector<2x256xf32>
    %13 = tpu.matmul %11, %12, %cst_9 {dimension_numbers = #tpu.dot_dimension_numbers<[1], [0], [0], [1], [0, 0, 1, 1], [], []>} : vector<2x512xbf16>, vector<512x256xbf16>, vector<2x256xf32> -> vector<2x256xf32>
    %c0_10 = arith.constant 0 : index
    %c0_11 = arith.constant 0 : index
    %14 = vector.load %arg5[%c0_10, %c0_11] : memref<1x256xf32, #tpu.memory_space<vmem>>, vector<1x256xf32>
    %15 = vector.broadcast %14 : vector<1x256xf32> to vector<2x256xf32>
    %16 = arith.addf %13, %15 : vector<2x256xf32>
    %cst_12 = arith.constant 0.000000e+00 : f32
    %17 = vector.broadcast %cst_12 : f32 to vector<2x256xf32>
    %18 = arith.cmpf ogt, %16, %17 : vector<2x256xf32>
    %cst_13 = arith.constant 2.000000e-01 : f32
    %19 = vector.broadcast %cst_13 : f32 to vector<2x256xf32>
    %20 = arith.mulf %19, %16 : vector<2x256xf32>
    %21 = arith.select %18, %16, %20 : vector<2x256xi1>, vector<2x256xf32>
    %c0_14 = arith.constant 0 : index
    %c0_15 = arith.constant 0 : index
    %22 = vector.load %arg6[%c0_14, %c0_15] : memref<1x256xf32, #tpu.memory_space<vmem>>, vector<1x256xf32>
    %23 = vector.broadcast %22 : vector<1x256xf32> to vector<2x256xf32>
    %24 = arith.mulf %21, %23 : vector<2x256xf32>
    %cst_16 = arith.constant dense<0.000000e+00> : vector<2xf32>
    %25 = vector.multi_reduction <add>, %24, %cst_16 [1] : vector<2x256xf32> to vector<2xf32>
    %26 = vector.shape_cast %25 : vector<2xf32> to vector<2x1xf32>
    %c0_17 = arith.constant 0 : index
    %c0_18 = arith.constant 0 : index
    %27 = memref.load %arg7[%c0_17, %c0_18] : memref<1x1xf32, #tpu.memory_space<smem>>
    %28 = vector.broadcast %27 : f32 to vector<2x1xf32>
    %29 = arith.addf %26, %28 : vector<2x1xf32>
    %cst_19 = arith.constant 0.000000e+00 : f32
    %30 = vector.broadcast %cst_19 : f32 to vector<2x1xf32>
    %31 = arith.subf %30, %29 : vector<2x1xf32>
    %32 = math.exp %31 : vector<2x1xf32>
    %cst_20 = arith.constant 1.000000e+00 : f32
    %33 = vector.broadcast %cst_20 : f32 to vector<2x1xf32>
    %34 = arith.addf %33, %32 : vector<2x1xf32>
    %35 = tpu.reciprocal %34 {approx = true} : vector<2x1xf32> -> vector<2x1xf32>
    %c0_21 = arith.constant 0 : index
    %c0_22 = arith.constant 0 : index
    %36 = vector.load %arg8[%c0_21, %c0_22] : memref<2x1xf32, #tpu.memory_space<vmem>>, vector<2x1xf32>
    tpu.vector_store %arg8[%c0_21, %c0_22], %35 {strides = array<i32>} : memref<2x1xf32, #tpu.memory_space<vmem>>, vector<2x1xf32>,
    return
  }
  func.func @transform_0(%arg0: i32) -> (i32, i32) {
    %c0_i32 = arith.constant 0 : i32
    %c0_i32_0 = arith.constant 0 : i32
    return %arg0, %c0_i32 : i32, i32
  }
  func.func @transform_1(%arg0: i32) -> (i32, i32) {
    %c0_i32 = arith.constant 0 : i32
    %c0_i32_0 = arith.constant 0 : i32
    %c0_i32_1 = arith.constant 0 : i32
    return %c0_i32, %c0_i32_0 : i32, i32
  }
  func.func @transform_2(%arg0: i32) -> (i32, i32) {
    %c0_i32 = arith.constant 0 : i32
    %c0_i32_0 = arith.constant 0 : i32
    %c0_i32_1 = arith.constant 0 : i32
    return %c0_i32, %c0_i32_0 : i32, i32
  }
  func.func @transform_3(%arg0: i32) -> (i32, i32) {
    %c0_i32 = arith.constant 0 : i32
    %c0_i32_0 = arith.constant 0 : i32
    %c0_i32_1 = arith.constant 0 : i32
    return %c0_i32, %c0_i32_0 : i32, i32
  }
  func.func @transform_4(%arg0: i32) -> (i32, i32) {
    %c0_i32 = arith.constant 0 : i32
    %c0_i32_0 = arith.constant 0 : i32
    %c0_i32_1 = arith.constant 0 : i32
    return %c0_i32, %c0_i32_0 : i32, i32
  }
  func.func @transform_5(%arg0: i32) -> (i32, i32) {
    %c0_i32 = arith.constant 0 : i32
    %c0_i32_0 = arith.constant 0 : i32
    %c0_i32_1 = arith.constant 0 : i32
    return %c0_i32, %c0_i32_0 : i32, i32
  }
  func.func @transform_6(%arg0: i32) -> (i32, i32) {
    %c0_i32 = arith.constant 0 : i32
    %c0_i32_0 = arith.constant 0 : i32
    %c0_i32_1 = arith.constant 0 : i32
    return %c0_i32, %c0_i32_0 : i32, i32
  }
  func.func @transform_7(%arg0: i32) -> (i32, i32) {
    %c0_i32 = arith.constant 0 : i32
    %c0_i32_0 = arith.constant 0 : i32
    return %arg0, %c0_i32 : i32, i32
  }
}

</mosaic_0001>

<bundles_post_ra>
// kernel: tpu_custom_call.1
= control target key start
LH: loop header
LB: loop body
LE: loop exit
PB: predicated region body
PF: predicated region fallthrough
CT: control target
= control target key end

     0   :  { %13 = vsyncpa [#allocation4], 0  ;;  %s3055_s0 = inlined_call_operand.hbm [shape: bf16[2,784], index: 0, kind: input, shape index: {}]   ;;  %s3056_s1 = inlined_call_operand.hbm [shape: bf16[784,512], index: 1, kind: input, shape index: {}]   ;;  %s3057_s2 = inlined_call_operand.vmem [shape: f32[1,512], index: 2, kind: input, shape index: {}]   ;;  %s3058_s3 = inlined_call_operand.hbm [shape: bf16[512,256], index: 3, kind: input, shape index: {}]   ;;  %s3059_s4 = inlined_call_operand.vmem [shape: f32[1,256], index: 4, kind: input, shape index: {}]   ;;  %s3060_s5 = inlined_call_operand.vmem [shape: f32[1,256], index: 5, kind: input, shape index: {}]   ;;  %s3061_s6 = inlined_call_operand.<no memory space> [shape: f32[1,1], index: 6, kind: input, shape index: {}]   ;;  %s3062_s7 = inlined_call_operand.vmem [shape: f32[2,1], index: 7, kind: output, shape index: {}]  }
   0x1   :  { %14 = vsyncpa [#allocation6], 0  ;;  %s2919_s24 = smov [#allocation5]  }
   0x2   :  { %s30_s25 = sshll.u32 %s2919_s24, 4  ;;  %s31_s25 = int_to_ptr.vmem [resolvable:$true] %s30_s25 }
   0x3   :  { %s2863_s26 = scalar_lea.vmem %s31_s25, 25088  ;;  %p2868_p1 = scmp.lt.s32.totalorder %s31_s25, %s31_s25 }
   0x4   :  { %p2864_p0 = scmp.ne.s32.totalorder %s31_s25, %s2863_s26  ;;  %p2869_p2 = scmp.lt.s32.totalorder %s2863_s26, %s2863_s26 }
   0x6   :  { %p2870_p3 = por %p2869_p2, %p2868_p1 }
   0x8   :  { %p2871_p4 = pnand %p2870_p3, %p2864_p0 }
   0xa   :  { %2874 = shalt.err (!%p2871_p4)
}
   0xb   :  { %s2920_s27 = smov 256   ;;  %s2921_s28 = smov 16  }
   0xc   :  { %36 = dma.hbm_to_vmem [thread:$0]  %s3056_s1, 25088, %s31_s25, [#allocation6], %s2920_s27, %s2920_s27, %s2921_s28  }
   0xd   :  { %s2922_s8 = smov [#allocation3]   ;;  %s2923_s10 = smov [#allocation7]  }
   0xe   :  { %s21_s9 = sshll.u32 %s2922_s8, 4  ;;  %s44_s11 = sshll.u32 %s2923_s10, 4  ;;  %s22_s9 = int_to_ptr.vmem [resolvable:$true] %s21_s9  ;;  %s45_s11 = int_to_ptr.vmem [resolvable:$true] %s44_s11 }
   0xf   :  { %s2883_s12 = scalar_lea.vmem %s22_s9, 112  ;;  %s2887_s13 = scalar_lea.vmem %s22_s9, 128 }
  0x10   :  { %p2884_p5 = scmp.ne.s32.totalorder %s22_s9, %s2883_s12  ;;  %p2888_p6 = scmp.lt.s32.totalorder %s22_s9, %s22_s9 }
  0x11   :  { %p2889_p7 = scmp.lt.s32.totalorder %s2887_s13, %s2883_s12 }
  0x13   :  { %p2890_p8 = por %p2889_p7, %p2888_p6 }
  0x15   :  { %p2891_p9 = pnand %p2890_p8, %p2884_p5 }
  0x17   :  { %2894 = shalt.err (!%p2891_p9)
}
  0x18   :  { %24 = dma.hbm_to_vmem [thread:$0]  %s3055_s0, 112, %s22_s9, [#allocation4]  }
  0x19   :  { %s2903_s16 = scalar_lea.vmem %s45_s11, 8192  ;;  %p2908_p11 = scmp.lt.s32.totalorder %s45_s11, %s45_s11 }
  0x1a   :  { %p2904_p10 = scmp.ne.s32.totalorder %s45_s11, %s2903_s16  ;;  %p2909_p12 = scmp.lt.s32.totalorder %s2903_s16, %s2903_s16 }
  0x1c   :  { %p2910_p13 = por %p2909_p12, %p2908_p11 }
  0x1e   :  { %p2911_p0 = pnand %p2910_p13, %p2904_p10 }
  0x20   :  { %2914 = shalt.err (!%p2911_p0)
}
  0x21   :  { %s2924_s1 = smov 128   ;;  %s2925_s17 = smov 8  }
  0x22   :  { %50 = dma.hbm_to_vmem [thread:$0]  %s3058_s3, 8192, %s45_s11, [#allocation6], %s2924_s1, %s2924_s1, %s2925_s17  }
  0x23   :  { %2915 = dma.done.wait [#allocation4], 112  }
  0x24   :  { %2916 = vsyncadd [#allocation4], 4294967184 }
  0x25   :  { %2917 = dma.done.wait [#allocation6], 33280  }
  0x26   :  { %2918 = vsyncadd [#allocation6], 4294934016  ;;  %v2460_v0 = vld [vmem:[#allocation5 + $0xe4] ss:$16 sps:$4 sm:$0xff]   ;;  %v2464_v2 = vld [vmem:[#allocation5 + $0xe0] ss:$16 sps:$4 sm:$0xff]   ;;  %v266_v36 = vlaneseq }
  0x27   :  { %v2462_v1 = vld [vmem:[#allocation5 + $0x2e4] ss:$16 sps:$4 sm:$0xff]   ;;  %1325 = vmatprep.subr.bf16.mxu0 %v2460_v0  ;;  %v2465_v3 = vld [vmem:[#allocation5 + $0x2e0] ss:$16 sps:$4 sm:$0xff]   ;;  %v2926_v37 = vmov 1966171168  }
  0x28   :  { %1366 = vmatprep.subr.bf16.mxu1 %v2462_v1  ;;  %v2466_v4 = vld [vmem:[#allocation5 + $0xc4] ss:$16 sps:$4 sm:$0xff]   ;;  %1326 = vmatpush1.bf16.msra.mxu0 %v2464_v2  ;;  %v2470_v6 = vld [vmem:[#allocation5 + $0xc0] ss:$16 sps:$4 sm:$0xff]   ;;  %v289_v38 = vunpack.c.l.s4 %v2926_v37  ;;  %v2977_v42 = vshrl.u32 %v266_v36, 7  ;;  %vm1321_vm0 = vcmask 130048  }
  0x29   :  { %1367 = vmatpush1.bf16.msra.mxu1 %v2465_v3  ;;  %v2468_v5 = vld [vmem:[#allocation5 + $0x2c4] ss:$16 sps:$4 sm:$0xff]   ;;  %1327 = vmatprep.subr.bf16.mxu0 %v2466_v4  ;;  %v2471_v7 = vld [vmem:[#allocation5 + $0x2c0] ss:$16 sps:$4 sm:$0xff]   ;;  %v67_v52 = vld [vmem:[#allocation3] sm:$0x7f] }
  0x2a   :  { %1368 = vmatprep.subr.bf16.mxu1 %v2468_v5  ;;  %v2472_v8 = vld [vmem:[#allocation5 + $0xa4] ss:$16 sps:$4 sm:$0xff]   ;;  %v2476_v10 = vld [vmem:[#allocation5 + $0xa0] ss:$16 sps:$4 sm:$0xff]   ;;  %v290_v43 = vunpack.c.0.s8 %v289_v38  ;;  %v2578_v36 = vld [vmem:[#allocation5 + $0xa8] ss:$16 sps:$4 sm:$0xff]  }
  0x2b   :  { %v2474_v9 = vld [vmem:[#allocation5 + $0x2a4] ss:$16 sps:$4 sm:$0xff]   ;;  %v2477_v11 = vld [vmem:[#allocation5 + $0x2a0] ss:$16 sps:$4 sm:$0xff]   ;;  %v2586_v38 = vld [vmem:[#allocation5 + $0x8c] ss:$16 sps:$4 sm:$0xff]  }
  0x2c   :  { %1328 = vmatpush1.bf16.msra.mxu0 %v2470_v6  ;;  %v2478_v12 = vld [vmem:[#allocation5 + $0x84] ss:$16 sps:$4 sm:$0xff]   ;;  %v2482_v14 = vld [vmem:[#allocation5 + $0x80] ss:$16 sps:$4 sm:$0xff]   ;;  %v2980_v49 = vsub.s32 %v290_v43, %v2977_v42  ;;  %v2592_v43 = vld [vmem:[#allocation5 + $0x6c] ss:$16 sps:$4 sm:$0xff]  }
  0x2d   :  { %1369 = vmatpush1.bf16.msra.mxu1 %v2471_v7  ;;  %1329 = vmatprep.subr.bf16.mxu0 %v2472_v8  ;;  %v2480_v13 = vld [vmem:[#allocation5 + $0x284] ss:$16 sps:$4 sm:$0xff]   ;;  %v2483_v15 = vld [vmem:[#allocation5 + $0x280] ss:$16 sps:$4 sm:$0xff]   ;;  %v287_v7 = vcombine.high %v67_v52, %v67_v52  ;;  %vm2167_vm7 = vcmask 1041408   ;;  %vm2181_vm8 = vcmask 1024  }
  0x2e   :  { %1370 = vmatprep.subr.bf16.mxu1 %v2474_v9  ;;  %v2484_v16 = vld [vmem:[#allocation5 + $0x64] ss:$16 sps:$4 sm:$0xff]   ;;  %v2488_v18 = vld [vmem:[#allocation5 + $0x60] ss:$16 sps:$4 sm:$0xff]   ;;  %v294_v54 = vrot.slane %v67_v52, %v2980_v49 }
  0x2f   :  { %v2486_v17 = vld [vmem:[#allocation5 + $0x264] ss:$16 sps:$4 sm:$0xff]   ;;  %v2489_v19 = vld [vmem:[#allocation5 + $0x260] ss:$16 sps:$4 sm:$0xff]  }
  0x30   :  { %1330 = vmatpush1.bf16.msra.mxu0 %v2476_v10  ;;  %v2490_v20 = vld [vmem:[#allocation5 + $0x44] ss:$16 sps:$4 sm:$0xff]   ;;  %v2494_v22 = vld [vmem:[#allocation5 + $0x40] ss:$16 sps:$4 sm:$0xff]   ;;  %v302_v58 = vcombine.high %v294_v54, %v294_v54 }
  0x31   :  { %1371 = vmatpush1.bf16.msra.mxu1 %v2477_v11  ;;  %1331 = vmatprep.subr.bf16.mxu0 %v2478_v12  ;;  %v2492_v21 = vld [vmem:[#allocation5 + $0x244] ss:$16 sps:$4 sm:$0xff]   ;;  %v2495_v23 = vld [vmem:[#allocation5 + $0x240] ss:$16 sps:$4 sm:$0xff]   ;;  %v2993_v11 = vrot.slane %v294_v54, %v2980_v49 }
  0x32   :  { %1372 = vmatprep.subr.bf16.mxu1 %v2480_v13  ;;  %v2496_v24 = vld [vmem:[#allocation5 + $0x24] ss:$16 sps:$4 sm:$0xff]   ;;  %v2500_v26 = vld [vmem:[#allocation5 + $0x20] ss:$16 sps:$4 sm:$0xff]   ;;  %v2984_v60 = vrot.slane %v302_v58, %v2980_v49  ;;  %v301_v13 = vrot.slane %v287_v7, %v2980_v49 }
  0x33   :  { %v2498_v25 = vld [vmem:[#allocation5 + $0x224] ss:$16 sps:$4 sm:$0xff]   ;;  %v2501_v27 = vld [vmem:[#allocation5 + $0x220] ss:$16 sps:$4 sm:$0xff]  }
  0x34   :  { %1332 = vmatpush1.bf16.msra.mxu0 %v2482_v14  ;;  %v2502_v28 = vld [vmem:[#allocation5 + $0x4] ss:$16 sps:$4 sm:$0xff]   ;;  %v2506_v30 = vld [vmem:[#allocation5] ss:$16 sps:$4 sm:$0xff]   ;;  %v2988_v0 = vcombine.high %v2984_v60, %v2984_v60  ;;  %1357 = vmatprep.mubr.bf16.mxu0 %v2984_v60 }
  0x35   :  { %1373 = vmatpush1.bf16.msra.mxu1 %v2483_v15  ;;  %1333 = vmatprep.subr.bf16.mxu0 %v2484_v16  ;;  %v2504_v29 = vld [vmem:[#allocation5 + $0x204] ss:$16 sps:$4 sm:$0xff]   ;;  %v2507_v31 = vld [vmem:[#allocation5 + $0x200] ss:$16 sps:$4 sm:$0xff]   ;;  %v303_v16 = vcombine.high %v301_v13, %v301_v13 }
  0x36   :  { %1374 = vmatprep.subr.bf16.mxu1 %v2486_v17  ;;  %v2508_v32 = vld [vmem:[#allocation5 + $0x1e4] ss:$16 sps:$4 sm:$0xff]   ;;  %v2512_v34 = vld [vmem:[#allocation5 + $0x1e0] ss:$16 sps:$4 sm:$0xff]   ;;  %1398 = vmatprep.mubr.bf16.mxu1 %v2988_v0  ;;  %v2998_v17 = vcombine.high %v2993_v11, %v2993_v11 }
  0x37   :  { %v2510_v33 = vld [vmem:[#allocation5 + $0x3e4] ss:$16 sps:$4 sm:$0xff]   ;;  %v2513_v35 = vld [vmem:[#allocation5 + $0x3e0] ss:$16 sps:$4 sm:$0xff]  }
  0x38   :  { %1334 = vmatpush1.bf16.msra.mxu0 %v2488_v18  ;;  %v2514_v39 = vld [vmem:[#allocation5 + $0x1c4] ss:$16 sps:$4 sm:$0xff]   ;;  %v2518_v41 = vld [vmem:[#allocation5 + $0x1c0] ss:$16 sps:$4 sm:$0xff]  }
  0x39   :  { %1375 = vmatpush1.bf16.msra.mxu1 %v2489_v19  ;;  %1335 = vmatprep.subr.bf16.mxu0 %v2490_v20  ;;  %v2516_v40 = vld [vmem:[#allocation5 + $0x3c4] ss:$16 sps:$4 sm:$0xff]   ;;  %v2519_v44 = vld [vmem:[#allocation5 + $0x3c0] ss:$16 sps:$4 sm:$0xff]  }
  0x3a   :  { %1376 = vmatprep.subr.bf16.mxu1 %v2492_v21  ;;  %v2520_v45 = vld [vmem:[#allocation5 + $0x1a4] ss:$16 sps:$4 sm:$0xff]   ;;  %v2524_v47 = vld [vmem:[#allocation5 + $0x1a0] ss:$16 sps:$4 sm:$0xff]   ;;  %v2568_v21 = vld [vmem:[#allocation5 + $0xec] ss:$16 sps:$4 sm:$0xff]  }
  0x3b   :  { %v2522_v46 = vld [vmem:[#allocation5 + $0x3a4] ss:$16 sps:$4 sm:$0xff]   ;;  %v2525_v48 = vld [vmem:[#allocation5 + $0x3a0] ss:$16 sps:$4 sm:$0xff]  }
  0x3c   :  { %1336 = vmatpush1.bf16.msra.mxu0 %v2494_v22  ;;  %v2526_v50 = vld [vmem:[#allocation5 + $0x184] ss:$16 sps:$4 sm:$0xff]   ;;  %v2530_v53 = vld [vmem:[#allocation5 + $0x180] ss:$16 sps:$4 sm:$0xff]   ;;  %v3001_v22 = vrot.slane %v303_v16, %v2980_v49 }
  0x3d   :  { %1377 = vmatpush1.bf16.msra.mxu1 %v2495_v23  ;;  %1337 = vmatprep.subr.bf16.mxu0 %v2496_v24  ;;  %v2528_v51 = vld [vmem:[#allocation5 + $0x384] ss:$16 sps:$4 sm:$0xff]   ;;  %v2531_v55 = vld [vmem:[#allocation5 + $0x380] ss:$16 sps:$4 sm:$0xff]   ;;  %v3004_v23 = vrot.slane %v301_v13, %v2980_v49  ;;  %v2596_v49 = vld [vmem:[#allocation5 + $0x48] ss:$16 sps:$4 sm:$0xff]  }
  0x3e   :  { %1378 = vmatprep.subr.bf16.mxu1 %v2498_v25  ;;  %v2532_v56 = vld [vmem:[#allocation5 + $0x164] ss:$16 sps:$4 sm:$0xff]   ;;  %v2536_v59 = vld [vmem:[#allocation5 + $0x160] ss:$16 sps:$4 sm:$0xff]   ;;  %v2927_v25 = vmov 0  }
  0x3f   :  { %v2534_v57 = vld [vmem:[#allocation5 + $0x364] ss:$16 sps:$4 sm:$0xff]   ;;  %v2537_v61 = vld [vmem:[#allocation5 + $0x360] ss:$16 sps:$4 sm:$0xff]   ;;  %v2640_v13 = vld [vmem:[#allocation5 + $0x16c] ss:$16 sps:$4 sm:$0xff]  }
  0x40   :  { %1338 = vmatpush1.bf16.msra.mxu0 %v2500_v26  ;;  %v2538_v62 = vld [vmem:[#allocation5 + $0x144] ss:$16 sps:$4 sm:$0xff]   ;;  %v2542_v1 = vld [vmem:[#allocation5 + $0x140] ss:$16 sps:$4 sm:$0xff]  }
  0x41   :  { %1379 = vmatpush1.bf16.msra.mxu1 %v2501_v27  ;;  %1339 = vmatprep.subr.bf16.mxu0 %v2502_v28  ;;  %v2540_v63 = vld [vmem:[#allocation5 + $0x344] ss:$16 sps:$4 sm:$0xff]   ;;  %v2543_v2 = vld [vmem:[#allocation5 + $0x340] ss:$16 sps:$4 sm:$0xff]   ;;  %v2566_v27 = vld [vmem:[#allocation5 + $0xe8] ss:$16 sps:$4 sm:$0xff]   ;;  %v3012_v28 = vcombine.high %v3004_v23, %v3004_v23 }
  0x42   :  { %1380 = vmatprep.subr.bf16.mxu1 %v2504_v29  ;;  %v2544_v3 = vld [vmem:[#allocation5 + $0x124] ss:$16 sps:$4 sm:$0xff]   ;;  %v2548_v5 = vld [vmem:[#allocation5 + $0x120] ss:$16 sps:$4 sm:$0xff]  }
  0x43   :  { %v2546_v4 = vld [vmem:[#allocation5 + $0x324] ss:$16 sps:$4 sm:$0xff]   ;;  %v2549_v6 = vld [vmem:[#allocation5 + $0x320] ss:$16 sps:$4 sm:$0xff]  }
  0x44   :  { %1340 = vmatpush1.bf16.msra.mxu0 %v2506_v30  ;;  %v2550_v8 = vld [vmem:[#allocation5 + $0x104] ss:$16 sps:$4 sm:$0xff]   ;;  %v2554_v10 = vld [vmem:[#allocation5 + $0x100] ss:$16 sps:$4 sm:$0xff]   ;;  %v2574_v30 = vld [vmem:[#allocation5 + $0xcc] ss:$16 sps:$4 sm:$0xff]  }
  0x45   :  { %1381 = vmatpush1.bf16.msra.mxu1 %v2507_v31  ;;  %1341 = vmatprep.subr.bf16.mxu0 %v2508_v32  ;;  %v2552_v9 = vld [vmem:[#allocation5 + $0x304] ss:$16 sps:$4 sm:$0xff]   ;;  %v2555_v12 = vld [vmem:[#allocation5 + $0x300] ss:$16 sps:$4 sm:$0xff]   ;;  %v2572_v32 = vld [vmem:[#allocation5 + $0xc8] ss:$16 sps:$4 sm:$0xff]  }
  0x46   :  { %1382 = vmatprep.subr.bf16.mxu1 %v2510_v33  ;;  %v2559_v14 = vld [vmem:[#allocation5 + $0x4e4] ss:$16 sps:$4 sm:$0xff]   ;;  %v2557_v18 = vld [vmem:[#allocation5 + $0x4e0] ss:$16 sps:$4 sm:$0xff]  }
  0x47   :  { %v2562_v15 = vld [vmem:[#allocation5 + $0x604] ss:$16 sps:$4 sm:$0xff]   ;;  %v2560_v19 = vld [vmem:[#allocation5 + $0x600] ss:$16 sps:$4 sm:$0xff]  }
  0x48   :  { %1342 = vmatpush2.bf16.msra.mxu0 %v2512_v34  ;;  %v2565_v20 = vld [vmem:[#allocation5 + $0x4c4] ss:$16 sps:$4 sm:$0xff]   ;;  %v2563_v24 = vld [vmem:[#allocation5 + $0x4c0] ss:$16 sps:$4 sm:$0xff]   ;;  %v2580_v34 = vld [vmem:[#allocation5 + $0xac] ss:$16 sps:$4 sm:$0xff]  }
  0x49   :  { %1383 = vmatpush2.bf16.msra.mxu1 %v2513_v35  ;;  %1343 = vmatprep.subr.bf16.mxu0 %v2514_v39  ;;  %v2571_v26 = vld [vmem:[#allocation5 + $0x4a4] ss:$16 sps:$4 sm:$0xff]   ;;  %v2569_v29 = vld [vmem:[#allocation5 + $0x4a0] ss:$16 sps:$4 sm:$0xff]  }
  0x4a   :  { %1384 = vmatprep.subr.bf16.mxu1 %v2516_v40  ;;  %v2577_v31 = vld [vmem:[#allocation5 + $0x484] ss:$16 sps:$4 sm:$0xff]   ;;  %v2575_v33 = vld [vmem:[#allocation5 + $0x480] ss:$16 sps:$4 sm:$0xff]   ;;  %v2584_v40 = vld [vmem:[#allocation5 + $0x88] ss:$16 sps:$4 sm:$0xff]  }
  0x4b   :  { %v2583_v35 = vld [vmem:[#allocation5 + $0x464] ss:$16 sps:$4 sm:$0xff]   ;;  %v2581_v37 = vld [vmem:[#allocation5 + $0x460] ss:$16 sps:$4 sm:$0xff]  }
  0x4c   :  { %1344 = vmatpush2.bf16.msra.mxu0 %v2518_v41  ;;  %v2589_v39 = vld [vmem:[#allocation5 + $0x444] ss:$16 sps:$4 sm:$0xff]   ;;  %v2587_v41 = vld [vmem:[#allocation5 + $0x440] ss:$16 sps:$4 sm:$0xff]  }
  0x4d   :  { %1385 = vmatpush2.bf16.msra.mxu1 %v2519_v44  ;;  %1345 = vmatprep.subr.bf16.mxu0 %v2520_v45  ;;  %v2595_v44 = vld [vmem:[#allocation5 + $0x424] ss:$16 sps:$4 sm:$0xff]   ;;  %v2590_v45 = vld [vmem:[#allocation5 + $0x68] ss:$16 sps:$4 sm:$0xff]   ;;  %v2605_v54 = vld [vmem:[#allocation5 + $0x5e0] ss:$16 sps:$4 sm:$0xff]  }
  0x4e   :  { %1386 = vmatprep.subr.bf16.mxu1 %v2522_v46  ;;  %v2593_v46 = vld [vmem:[#allocation5 + $0x420] ss:$16 sps:$4 sm:$0xff]   ;;  %v2607_v52 = vld [vmem:[#allocation5 + $0x5e4] ss:$16 sps:$4 sm:$0xff]  }
  0x4f   :  { %v2611_v58 = vld [vmem:[#allocation5 + $0x5c0] ss:$16 sps:$4 sm:$0xff]  }
  0x50   :  { %1346 = vmatpush2.bf16.msra.mxu0 %v2524_v47  ;;  %v2598_v47 = vld [vmem:[#allocation5 + $0x4c] ss:$16 sps:$4 sm:$0xff]   ;;  %v2629_v7 = vld [vmem:[#allocation5 + $0x560] ss:$16 sps:$4 sm:$0xff]  }
  0x51   :  { %1387 = vmatpush2.bf16.msra.mxu1 %v2525_v48  ;;  %1347 = vmatprep.subr.bf16.mxu0 %v2526_v50  ;;  %v2601_v48 = vld [vmem:[#allocation5 + $0x404] ss:$16 sps:$4 sm:$0xff]   ;;  %v2599_v50 = vld [vmem:[#allocation5 + $0x400] ss:$16 sps:$4 sm:$0xff]  }
  0x52   :  { %1388 = vmatprep.subr.bf16.mxu1 %v2528_v51  ;;  %v2604_v51 = vld [vmem:[#allocation5 + $0x2c] ss:$16 sps:$4 sm:$0xff]   ;;  %v2641_v16 = vld [vmem:[#allocation5 + $0x520] ss:$16 sps:$4 sm:$0xff]  }
  0x54   :  { %1348 = vmatpush2.bf16.msra.mxu0 %v2530_v53  ;;  %v2602_v53 = vld [vmem:[#allocation5 + $0x28] ss:$16 sps:$4 sm:$0xff]  }
  0x55   :  { %1389 = vmatpush2.bf16.msra.mxu1 %v2531_v55  ;;  %1349 = vmatprep.subr.bf16.mxu0 %v2532_v56  ;;  %v2610_v55 = vld [vmem:[#allocation5 + $0xc] ss:$16 sps:$4 sm:$0xff]   ;;  %v2613_v56 = vld [vmem:[#allocation5 + $0x5c4] ss:$16 sps:$4 sm:$0xff]  }
  0x56   :  { %1390 = vmatprep.subr.bf16.mxu1 %v2534_v57  ;;  %v2608_v57 = vld [vmem:[#allocation5 + $0x8] ss:$16 sps:$4 sm:$0xff]  }
  0x58   :  { %1350 = vmatpush2.bf16.msra.mxu0 %v2536_v59  ;;  %v2616_v59 = vld [vmem:[#allocation5 + $0x1ec] ss:$16 sps:$4 sm:$0xff]  }
  0x59   :  { %1391 = vmatpush2.bf16.msra.mxu1 %v2537_v61  ;;  %1351 = vmatprep.subr.bf16.mxu0 %v2538_v62  ;;  %v2614_v61 = vld [vmem:[#allocation5 + $0x1e8] ss:$16 sps:$4 sm:$0xff]   ;;  %v2617_v62 = vld [vmem:[#allocation5 + $0x5a0] ss:$16 sps:$4 sm:$0xff]  }
  0x5a   :  { %1392 = vmatprep.subr.bf16.mxu1 %v2540_v63  ;;  %v2622_v63 = vld [vmem:[#allocation5 + $0x1cc] ss:$16 sps:$4 sm:$0xff]  }
  0x5c   :  { %1352 = vmatpush2.bf16.msra.mxu0 %v2542_v1  ;;  %v2625_v1 = vld [vmem:[#allocation5 + $0x584] ss:$16 sps:$4 sm:$0xff]  }
  0x5d   :  { %1393 = vmatpush2.bf16.msra.mxu1 %v2543_v2  ;;  %1353 = vmatprep.subr.bf16.mxu0 %v2544_v3  ;;  %v2620_v2 = vld [vmem:[#allocation5 + $0x1c8] ss:$16 sps:$4 sm:$0xff]   ;;  %v2623_v3 = vld [vmem:[#allocation5 + $0x580] ss:$16 sps:$4 sm:$0xff]  }
  0x5e   :  { %1394 = vmatprep.subr.bf16.mxu1 %v2546_v4  ;;  %v2628_v4 = vld [vmem:[#allocation5 + $0x1ac] ss:$16 sps:$4 sm:$0xff]  }
  0x60   :  { %1354 = vmatpush2.bf16.msra.mxu0 %v2548_v5  ;;  %v2631_v5 = vld [vmem:[#allocation5 + $0x564] ss:$16 sps:$4 sm:$0xff]  }
  0x61   :  { %1395 = vmatpush2.bf16.msra.mxu1 %v2549_v6  ;;  %1355 = vmatprep.subr.bf16.mxu0 %v2550_v8  ;;  %v2626_v6 = vld [vmem:[#allocation5 + $0x1a8] ss:$16 sps:$4 sm:$0xff]   ;;  %v2634_v8 = vld [vmem:[#allocation5 + $0x18c] ss:$16 sps:$4 sm:$0xff]  }
  0x62   :  { %1396 = vmatprep.subr.bf16.mxu1 %v2552_v9  ;;  %v2637_v9 = vld [vmem:[#allocation5 + $0x544] ss:$16 sps:$4 sm:$0xff]  }
  0x64   :  { %1356 = vmatpush2.bf16.msra.mxu0 %v2554_v10  ;;  %v2632_v10 = vld [vmem:[#allocation5 + $0x188] ss:$16 sps:$4 sm:$0xff]  }
  0x65   :  { %1397 = vmatpush2.bf16.msra.mxu1 %v2555_v12  ;;  %1407 = vmatprep.subr.bf16.mxu0 %v2559_v14  ;;  %v2635_v12 = vld [vmem:[#allocation5 + $0x540] ss:$16 sps:$4 sm:$0xff]   ;;  %v2643_v14 = vld [vmem:[#allocation5 + $0x524] ss:$16 sps:$4 sm:$0xff]  }
  0x66   :  { %1462 = vmatprep.subr.bf16.mxu1 %v2562_v15  ;;  %v2638_v15 = vld [vmem:[#allocation5 + $0x168] ss:$16 sps:$4 sm:$0xff]  }
  0x67   :  { %1358 = vmatmul.mubr.bf16.vlgmr.msra.gmra.mxu0 %v2993_v11 }
  0x68   :  { %1399 = vmatmul.mubr.bf16.vlgmr.msra.gmra.mxu1 %v2998_v17  ;;  %1408 = vmatpush1.bf16.msra.mxu0 %v2557_v18  ;;  %v2646_v18 = vld [vmem:[#allocation5 + $0x14c] ss:$16 sps:$4 sm:$0xff]  }
  0x69   :  { %1463 = vmatpush1.bf16.msra.mxu1 %v2560_v19  ;;  %1409 = vmatprep.subr.bf16.mxu0 %v2565_v20  ;;  %v2649_v19 = vld [vmem:[#allocation5 + $0x504] ss:$16 sps:$4 sm:$0xff]   ;;  %v2644_v20 = vld [vmem:[#allocation5 + $0x148] ss:$16 sps:$4 sm:$0xff]  }
  0x6a   :  { %1480 = vmatprep.mubr.bf16.mxu1 %v2927_v25  ;;  %1489 = vmatprep.subr.bf16.mxu1 %v2568_v21  ;;  %v2647_v21 = vld [vmem:[#allocation5 + $0x500] ss:$16 sps:$4 sm:$0xff]  }
  0x6b   :  { %1439 = vmatprep.mubr.bf16.mxu0 %v3001_v22 }
  0x6c   :  { %1410 = vmatpush1.bf16.msra.mxu0 %v2563_v24  ;;  %v2652_v24 = vld [vmem:[#allocation5 + $0x12c] ss:$16 sps:$4 sm:$0xff]  }
  0x6d   :  { %1411 = vmatprep.subr.bf16.mxu0 %v2571_v26  ;;  %v2655_v26 = vld [vmem:[#allocation5 + $0x2ec] ss:$16 sps:$4 sm:$0xff]  }
  0x70   :  { %2385 = vmatmul.mubr.msk.bf16.vlgmr.msra.gmra.mxu1 %vm1321_vm0, %v3012_v28  ;;  %1412 = vmatpush1.bf16.msra.mxu0 %v2569_v29  ;;  %v2653_v29 = vld [vmem:[#allocation5 + $0x2e8] ss:$16 sps:$4 sm:$0xff]  }
  0x71   :  { %1490 = vmatpush1.bf16.msra.mxu1 %v2566_v27  ;;  %1413 = vmatprep.subr.bf16.mxu0 %v2577_v31  ;;  %v2650_v27 = vld [vmem:[#allocation5 + $0x128] ss:$16 sps:$4 sm:$0xff]   ;;  %v2661_v31 = vld [vmem:[#allocation5 + $0x2cc] ss:$16 sps:$4 sm:$0xff]  }
  0x72   :  { %1491 = vmatprep.subr.bf16.mxu1 %v2574_v30  ;;  %1521 = vmatprep.mubr.bf16.mxu1 %v2984_v60  ;;  %v2619_v60 = vld [vmem:[#allocation5 + $0x5a4] ss:$16 sps:$4 sm:$0xff]   ;;  %v2658_v30 = vld [vmem:[#allocation5 + $0x10c] ss:$16 sps:$4 sm:$0xff]  }
  0x74   :  { %1414 = vmatpush1.bf16.msra.mxu0 %v2575_v33  ;;  %v2659_v33 = vld [vmem:[#allocation5 + $0x2c8] ss:$16 sps:$4 sm:$0xff]  }
  0x75   :  { %1492 = vmatpush1.bf16.msra.mxu1 %v2572_v32  ;;  %1415 = vmatprep.subr.bf16.mxu0 %v2583_v35  ;;  %v2656_v32 = vld [vmem:[#allocation5 + $0x108] ss:$16 sps:$4 sm:$0xff]   ;;  %v2667_v35 = vld [vmem:[#allocation5 + $0x2ac] ss:$16 sps:$4 sm:$0xff]  }
  0x76   :  { %1493 = vmatprep.subr.bf16.mxu1 %v2580_v34  ;;  %v2664_v34 = vld [vmem:[#allocation5 + $0x4ec] ss:$16 sps:$4 sm:$0xff]  }
  0x78   :  { %1416 = vmatpush1.bf16.msra.mxu0 %v2581_v37  ;;  %v2665_v37 = vld [vmem:[#allocation5 + $0x2a8] ss:$16 sps:$4 sm:$0xff]  }
  0x79   :  { %1494 = vmatpush1.bf16.msra.mxu1 %v2578_v36  ;;  %1417 = vmatprep.subr.bf16.mxu0 %v2589_v39  ;;  %v2662_v36 = vld [vmem:[#allocation5 + $0x4e8] ss:$16 sps:$4 sm:$0xff]   ;;  %v2673_v39 = vld [vmem:[#allocation5 + $0x28c] ss:$16 sps:$4 sm:$0xff]  }
  0x7a   :  { %1495 = vmatprep.subr.bf16.mxu1 %v2586_v38  ;;  %v2670_v38 = vld [vmem:[#allocation5 + $0x4cc] ss:$16 sps:$4 sm:$0xff]  }
  0x7c   :  { %1418 = vmatpush1.bf16.msra.mxu0 %v2587_v41  ;;  %v2671_v41 = vld [vmem:[#allocation5 + $0x288] ss:$16 sps:$4 sm:$0xff]  }
  0x7d   :  { %1496 = vmatpush1.bf16.msra.mxu1 %v2584_v40  ;;  %1419 = vmatprep.subr.bf16.mxu0 %v2595_v44  ;;  %v2668_v40 = vld [vmem:[#allocation5 + $0x4c8] ss:$16 sps:$4 sm:$0xff]   ;;  %v2679_v44 = vld [vmem:[#allocation5 + $0x26c] ss:$16 sps:$4 sm:$0xff]  }
  0x7e   :  { %1497 = vmatprep.subr.bf16.mxu1 %v2592_v43  ;;  %v2676_v43 = vld [vmem:[#allocation5 + $0x4ac] ss:$16 sps:$4 sm:$0xff]  }
  0x80   :  { %1420 = vmatpush1.bf16.msra.mxu0 %v2593_v46  ;;  %v2682_v46 = vld [vmem:[#allocation5 + $0x48c] ss:$16 sps:$4 sm:$0xff]  }
  0x81   :  { %1498 = vmatpush1.bf16.msra.mxu1 %v2590_v45  ;;  %1421 = vmatprep.subr.bf16.mxu0 %v2601_v48  ;;  %v2674_v45 = vld [vmem:[#allocation5 + $0x4a8] ss:$16 sps:$4 sm:$0xff]  }
  0x82   :  { %1499 = vmatprep.subr.bf16.mxu1 %v2598_v47  ;;  %v2685_v47 = vld [vmem:[#allocation5 + $0x24c] ss:$16 sps:$4 sm:$0xff]   ;;  %v2680_v48 = vld [vmem:[#allocation5 + $0x488] ss:$16 sps:$4 sm:$0xff]  }
  0x84   :  { %1422 = vmatpush1.bf16.msra.mxu0 %v2599_v50  ;;  %v2691_v50 = vld [vmem:[#allocation5 + $0x22c] ss:$16 sps:$4 sm:$0xff]  }
  0x85   :  { %1500 = vmatpush1.bf16.msra.mxu1 %v2596_v49  ;;  %1423 = vmatprep.subr.bf16.mxu0 %v2607_v52  ;;  %v2688_v49 = vld [vmem:[#allocation5 + $0x46c] ss:$16 sps:$4 sm:$0xff]  }
  0x86   :  { %1501 = vmatprep.subr.bf16.mxu1 %v2604_v51  ;;  %v2686_v51 = vld [vmem:[#allocation5 + $0x468] ss:$16 sps:$4 sm:$0xff]   ;;  %v2694_v52 = vld [vmem:[#allocation5 + $0x44c] ss:$16 sps:$4 sm:$0xff]  }
  0x88   :  { %1424 = vmatpush2.bf16.msra.mxu0 %v2605_v54  ;;  %v2692_v54 = vld [vmem:[#allocation5 + $0x448] ss:$16 sps:$4 sm:$0xff]  }
  0x89   :  { %1502 = vmatpush1.bf16.msra.mxu1 %v2602_v53  ;;  %1425 = vmatprep.subr.bf16.mxu0 %v2613_v56  ;;  %v2697_v53 = vld [vmem:[#allocation5 + $0x20c] ss:$16 sps:$4 sm:$0xff]  }
  0x8a   :  { %1503 = vmatprep.subr.bf16.mxu1 %v2610_v55  ;;  %v2695_v55 = vld [vmem:[#allocation5 + $0x208] ss:$16 sps:$4 sm:$0xff]   ;;  %v2700_v56 = vld [vmem:[#allocation5 + $0x42c] ss:$16 sps:$4 sm:$0xff]  }
  0x8c   :  { %1426 = vmatpush2.bf16.msra.mxu0 %v2611_v58  ;;  %v2698_v58 = vld [vmem:[#allocation5 + $0x428] ss:$16 sps:$4 sm:$0xff]  }
  0x8d   :  { %1504 = vmatpush1.bf16.msra.mxu1 %v2608_v57  ;;  %1427 = vmatprep.subr.bf16.mxu0 %v2619_v60  ;;  %v2703_v57 = vld [vmem:[#allocation5 + $0x3ec] ss:$16 sps:$4 sm:$0xff]  }
  0x8e   :  { %1505 = vmatprep.subr.bf16.mxu1 %v2616_v59  ;;  %v2701_v59 = vld [vmem:[#allocation5 + $0x3e8] ss:$16 sps:$4 sm:$0xff]   ;;  %v2706_v60 = vld [vmem:[#allocation5 + $0x40c] ss:$16 sps:$4 sm:$0xff]  }
  0x90   :  { %1428 = vmatpush2.bf16.msra.mxu0 %v2617_v62  ;;  %v2704_v62 = vld [vmem:[#allocation5 + $0x408] ss:$16 sps:$4 sm:$0xff]  }
  0x91   :  { %1506 = vmatpush2.bf16.msra.mxu1 %v2614_v61  ;;  %1429 = vmatprep.subr.bf16.mxu0 %v2625_v1  ;;  %v2709_v61 = vld [vmem:[#allocation5 + $0x3cc] ss:$16 sps:$4 sm:$0xff]  }
  0x92   :  { %1507 = vmatprep.subr.bf16.mxu1 %v2622_v63  ;;  %v2707_v63 = vld [vmem:[#allocation5 + $0x3c8] ss:$16 sps:$4 sm:$0xff]   ;;  %v2712_v1 = vld [vmem:[#allocation5 + $0x5ec] ss:$16 sps:$4 sm:$0xff]  }
  0x94   :  { %1430 = vmatpush2.bf16.msra.mxu0 %v2623_v3  ;;  %v2710_v3 = vld [vmem:[#allocation5 + $0x5e8] ss:$16 sps:$4 sm:$0xff]  }
  0x95   :  { %1508 = vmatpush2.bf16.msra.mxu1 %v2620_v2  ;;  %1431 = vmatprep.subr.bf16.mxu0 %v2631_v5  ;;  %v2715_v2 = vld [vmem:[#allocation5 + $0x3ac] ss:$16 sps:$4 sm:$0xff]  }
  0x96   :  { %1509 = vmatprep.subr.bf16.mxu1 %v2628_v4  ;;  %v2713_v4 = vld [vmem:[#allocation5 + $0x3a8] ss:$16 sps:$4 sm:$0xff]   ;;  %v2718_v5 = vld [vmem:[#allocation5 + $0x5cc] ss:$16 sps:$4 sm:$0xff]  }
  0x98   :  { %1432 = vmatpush2.bf16.msra.mxu0 %v2629_v7  ;;  %v2716_v7 = vld [vmem:[#allocation5 + $0x5c8] ss:$16 sps:$4 sm:$0xff]  }
  0x99   :  { %1510 = vmatpush2.bf16.msra.mxu1 %v2626_v6  ;;  %1433 = vmatprep.subr.bf16.mxu0 %v2637_v9  ;;  %v2721_v6 = vld [vmem:[#allocation5 + $0x38c] ss:$16 sps:$4 sm:$0xff]  }
  0x9a   :  { %1511 = vmatprep.subr.bf16.mxu1 %v2634_v8  ;;  %v2719_v8 = vld [vmem:[#allocation5 + $0x388] ss:$16 sps:$4 sm:$0xff]   ;;  %v2724_v9 = vld [vmem:[#allocation5 + $0x5ac] ss:$16 sps:$4 sm:$0xff]  }
  0x9c   :  { %1434 = vmatpush2.bf16.msra.mxu0 %v2635_v12  ;;  %v2722_v12 = vld [vmem:[#allocation5 + $0x5a8] ss:$16 sps:$4 sm:$0xff]  }
  0x9d   :  { %1512 = vmatpush2.bf16.msra.mxu1 %v2632_v10  ;;  %1435 = vmatprep.subr.bf16.mxu0 %v2643_v14  ;;  %v2727_v10 = vld [vmem:[#allocation5 + $0x36c] ss:$16 sps:$4 sm:$0xff]  }
  0x9e   :  { %1513 = vmatprep.subr.bf16.mxu1 %v2640_v13  ;;  %v2725_v13 = vld [vmem:[#allocation5 + $0x368] ss:$16 sps:$4 sm:$0xff]   ;;  %v2730_v14 = vld [vmem:[#allocation5 + $0x58c] ss:$16 sps:$4 sm:$0xff]  }
  0xa0   :  { %1436 = vmatpush2.bf16.msra.mxu0 %v2641_v16  ;;  %v2728_v16 = vld [vmem:[#allocation5 + $0x588] ss:$16 sps:$4 sm:$0xff]  }
  0xa1   :  { %1514 = vmatpush2.bf16.msra.mxu1 %v2638_v15  ;;  %1437 = vmatprep.subr.bf16.mxu0 %v2649_v19  ;;  %v2733_v15 = vld [vmem:[#allocation5 + $0x34c] ss:$16 sps:$4 sm:$0xff]  }
  0xa2   :  { %1515 = vmatprep.subr.bf16.mxu1 %v2646_v18  ;;  %v2731_v18 = vld [vmem:[#allocation5 + $0x348] ss:$16 sps:$4 sm:$0xff]   ;;  %v2736_v19 = vld [vmem:[#allocation5 + $0x56c] ss:$16 sps:$4 sm:$0xff]  }
  0xa4   :  { %1438 = vmatpush2.bf16.msra.mxu0 %v2647_v21  ;;  %v2734_v21 = vld [vmem:[#allocation5 + $0x568] ss:$16 sps:$4 sm:$0xff]  }
  0xa5   :  { %1516 = vmatpush2.bf16.msra.mxu1 %v2644_v20  ;;  %1530 = vmatprep.subr.bf16.mxu0 %v2655_v26  ;;  %v2739_v20 = vld [vmem:[#allocation5 + $0x32c] ss:$16 sps:$4 sm:$0xff]  }
  0xa6   :  { %1517 = vmatprep.subr.bf16.mxu1 %v2652_v24  ;;  %v2737_v24 = vld [vmem:[#allocation5 + $0x328] ss:$16 sps:$4 sm:$0xff]   ;;  %v2742_v26 = vld [vmem:[#allocation5 + $0x54c] ss:$16 sps:$4 sm:$0xff]  }
  0xa7   :  { %1440 = vmatmul.mubr.bf16.vlgmr.msra.gmra.mxu0 %v3004_v23 }
  0xa8   :  { %1531 = vmatpush1.bf16.msra.mxu0 %v2653_v29  ;;  %1562 = vmatprep.mubr.bf16.mxu0 %v2988_v0  ;;  %v2677_v0 = vld [vmem:[#allocation5 + $0x268] ss:$16 sps:$4 sm:$0xff]  }
  0xa9   :  { %1518 = vmatpush2.bf16.msra.mxu1 %v2650_v27  ;;  %1532 = vmatprep.subr.bf16.mxu0 %v2661_v31  ;;  %v2745_v27 = vld [vmem:[#allocation5 + $0x30c] ss:$16 sps:$4 sm:$0xff]   ;;  %v2740_v29 = vld [vmem:[#allocation5 + $0x548] ss:$16 sps:$4 sm:$0xff]  }
  0xaa   :  { %1519 = vmatprep.subr.bf16.mxu1 %v2658_v30  ;;  %v2743_v30 = vld [vmem:[#allocation5 + $0x308] ss:$16 sps:$4 sm:$0xff]   ;;  %v2748_v31 = vld [vmem:[#allocation5 + $0x52c] ss:$16 sps:$4 sm:$0xff]  }
  0xac   :  { %1533 = vmatpush1.bf16.msra.mxu0 %v2659_v33  ;;  %v2746_v33 = vld [vmem:[#allocation5 + $0x528] ss:$16 sps:$4 sm:$0xff]  }
  0xad   :  { %1520 = vmatpush2.bf16.msra.mxu1 %v2656_v32  ;;  %1534 = vmatprep.subr.bf16.mxu0 %v2667_v35  ;;  %v2751_v32 = vld [vmem:[#allocation5 + $0x60c] ss:$16 sps:$4 sm:$0xff]  }
  0xae   :  { %1571 = vmatprep.subr.bf16.mxu1 %v2664_v34  ;;  %v2749_v34 = vld [vmem:[#allocation5 + $0x608] ss:$16 sps:$4 sm:$0xff]   ;;  %v2754_v35 = vld [vmem:[#allocation5 + $0x50c] ss:$16 sps:$4 sm:$0xff]  }
  0xb0   :  { %1522 = vmatmul.mubr.bf16.vlgmr.msra.gmra.mxu1 %v2993_v11  ;;  %1535 = vmatpush1.bf16.msra.mxu0 %v2665_v37  ;;  %v2683_v11 = vld [vmem:[#allocation5 + $0x248] ss:$16 sps:$4 sm:$0xff]  }
  0xb1   :  { %1572 = vmatpush1.bf16.msra.mxu1 %v2662_v36  ;;  %1536 = vmatprep.subr.bf16.mxu0 %v2673_v39  ;;  %v2757_v36 = vld [vmem:[#allocation7 + $0x74] ss:$8 sps:$4 sm:$0xff]   ;;  %v2752_v37 = vld [vmem:[#allocation5 + $0x508] ss:$16 sps:$4 sm:$0xff]   ;;  %v2760_v39 = vld [vmem:[#allocation7 + $0x64] ss:$8 sps:$4 sm:$0xff]  }
  0xb2   :  { %1573 = vmatprep.subr.bf16.mxu1 %v2670_v38  ;;  %1603 = vmatprep.mubr.bf16.mxu1 %v3001_v22  ;;  %v2689_v22 = vld [vmem:[#allocation5 + $0x228] ss:$16 sps:$4 sm:$0xff]  }
  0xb3   :  { %v2755_v38 = vld [vmem:[#allocation7 + $0x70] ss:$8 sps:$4 sm:$0xff]  }
  0xb4   :  { %1537 = vmatpush1.bf16.msra.mxu0 %v2671_v41  ;;  %v2763_v41 = vld [vmem:[#allocation7 + $0x54] ss:$8 sps:$4 sm:$0xff]  }
  0xb5   :  { %1574 = vmatpush1.bf16.msra.mxu1 %v2668_v40  ;;  %1538 = vmatprep.subr.bf16.mxu0 %v2679_v44  ;;  %v2758_v40 = vld [vmem:[#allocation7 + $0x60] ss:$8 sps:$4 sm:$0xff]   ;;  %v2803_v44 = vld [vmem:[#allocation7 + $0x170] ss:$8 sps:$4 sm:$0xff]  }
  0xb6   :  { %1575 = vmatprep.subr.bf16.mxu1 %v2676_v43  ;;  %v2766_v43 = vld [vmem:[#allocation7 + $0x44] ss:$8 sps:$4 sm:$0xff]  }
  0xb8   :  { %1539 = vmatpush1.bf16.msra.mxu0 %v2677_v0  ;;  %v2764_v0 = vld [vmem:[#allocation7 + $0x40] ss:$8 sps:$4 sm:$0xff]  }
  0xb9   :  { %1576 = vmatpush1.bf16.msra.mxu1 %v2674_v45  ;;  %1540 = vmatprep.subr.bf16.mxu0 %v2685_v47  ;;  %v2805_v45 = vld [vmem:[#allocation7 + $0x174] ss:$8 sps:$4 sm:$0xff]   ;;  %v2767_v47 = vld [vmem:[#allocation7 + $0x30] ss:$8 sps:$4 sm:$0xff]  }
  0xba   :  { %1577 = vmatprep.subr.bf16.mxu1 %v2682_v46  ;;  %v2806_v46 = vld [vmem:[#allocation7 + $0x160] ss:$8 sps:$4 sm:$0xff]  }
  0xbc   :  { %1541 = vmatpush1.bf16.msra.mxu0 %v2683_v11  ;;  %v2772_v11 = vld [vmem:[#allocation7 + $0x24] ss:$8 sps:$4 sm:$0xff]  }
  0xbd   :  { %1578 = vmatpush1.bf16.msra.mxu1 %v2680_v48  ;;  %1542 = vmatprep.subr.bf16.mxu0 %v2691_v50  ;;  %v2809_v48 = vld [vmem:[#allocation7 + $0x150] ss:$8 sps:$4 sm:$0xff]   ;;  %v2770_v50 = vld [vmem:[#allocation7 + $0x20] ss:$8 sps:$4 sm:$0xff]  }
  0xbe   :  { %1579 = vmatprep.subr.bf16.mxu1 %v2688_v49  ;;  %v2814_v49 = vld [vmem:[#allocation7 + $0x144] ss:$8 sps:$4 sm:$0xff]  }
  0xc0   :  { %1543 = vmatpush1.bf16.msra.mxu0 %v2689_v22  ;;  %v2775_v22 = vld [vmem:[#allocation7 + $0x14] ss:$8 sps:$4 sm:$0xff]  }
  0xc1   :  { %1580 = vmatpush1.bf16.msra.mxu1 %v2686_v51  ;;  %1544 = vmatprep.subr.bf16.mxu0 %v2697_v53  ;;  %v2812_v51 = vld [vmem:[#allocation7 + $0x140] ss:$8 sps:$4 sm:$0xff]   ;;  %v2773_v53 = vld [vmem:[#allocation7 + $0x10] ss:$8 sps:$4 sm:$0xff]  }
  0xc2   :  { %1581 = vmatprep.subr.bf16.mxu1 %v2694_v52  ;;  %v2817_v52 = vld [vmem:[#allocation7 + $0x134] ss:$8 sps:$4 sm:$0xff]  }
  0xc4   :  { %1545 = vmatpush1.bf16.msra.mxu0 %v2695_v55  ;;  %v2778_v55 = vld [vmem:[#allocation7 + $0x4] ss:$8 sps:$4 sm:$0xff]  }
  0xc5   :  { %1582 = vmatpush1.bf16.msra.mxu1 %v2692_v54  ;;  %1546 = vmatprep.subr.bf16.mxu0 %v2703_v57  ;;  %v2815_v54 = vld [vmem:[#allocation7 + $0x130] ss:$8 sps:$4 sm:$0xff]   ;;  %v2776_v57 = vld [vmem:[#allocation7] ss:$8 sps:$4 sm:$0xff]  }
  0xc6   :  { %1583 = vmatprep.subr.bf16.mxu1 %v2700_v56  ;;  %v2820_v56 = vld [vmem:[#allocation7 + $0x124] ss:$8 sps:$4 sm:$0xff]  }
  0xc8   :  { %1547 = vmatpush2.bf16.msra.mxu0 %v2701_v59  ;;  %v2781_v59 = vld [vmem:[#allocation7 + $0xf4] ss:$8 sps:$4 sm:$0xff]  }
  0xc9   :  { %1584 = vmatpush1.bf16.msra.mxu1 %v2698_v58  ;;  %1548 = vmatprep.subr.bf16.mxu0 %v2709_v61  ;;  %v2818_v58 = vld [vmem:[#allocation7 + $0x120] ss:$8 sps:$4 sm:$0xff]   ;;  %v2779_v61 = vld [vmem:[#allocation7 + $0xf0] ss:$8 sps:$4 sm:$0xff]  }
  0xca   :  { %1585 = vmatprep.subr.bf16.mxu1 %v2706_v60  ;;  %v2823_v60 = vld [vmem:[#allocation7 + $0x114] ss:$8 sps:$4 sm:$0xff]  }
  0xcc   :  { %1549 = vmatpush2.bf16.msra.mxu0 %v2707_v63  ;;  %v2784_v63 = vld [vmem:[#allocation7 + $0xe4] ss:$8 sps:$4 sm:$0xff]  }
  0xcd   :  { %1586 = vmatpush1.bf16.msra.mxu1 %v2704_v62  ;;  %1550 = vmatprep.subr.bf16.mxu0 %v2715_v2  ;;  %v2821_v62 = vld [vmem:[#allocation7 + $0x110] ss:$8 sps:$4 sm:$0xff]   ;;  %v2782_v2 = vld [vmem:[#allocation7 + $0xe0] ss:$8 sps:$4 sm:$0xff]  }
  0xce   :  { %1587 = vmatprep.subr.bf16.mxu1 %v2712_v1  ;;  %v2826_v1 = vld [vmem:[#allocation7 + $0x104] ss:$8 sps:$4 sm:$0xff]  }
  0xd0   :  { %1551 = vmatpush2.bf16.msra.mxu0 %v2713_v4  ;;  %v2787_v4 = vld [vmem:[#allocation7 + $0xd4] ss:$8 sps:$4 sm:$0xff]  }
  0xd1   :  { %1588 = vmatpush2.bf16.msra.mxu1 %v2710_v3  ;;  %1552 = vmatprep.subr.bf16.mxu0 %v2721_v6  ;;  %v2824_v3 = vld [vmem:[#allocation7 + $0x100] ss:$8 sps:$4 sm:$0xff]   ;;  %v2785_v6 = vld [vmem:[#allocation7 + $0xd0] ss:$8 sps:$4 sm:$0xff]  }
  0xd2   :  { %1589 = vmatprep.subr.bf16.mxu1 %v2718_v5  ;;  %v2829_v5 = vld [vmem:[#allocation7 + $0x1f4] ss:$8 sps:$4 sm:$0xff]  }
  0xd4   :  { %1553 = vmatpush2.bf16.msra.mxu0 %v2719_v8  ;;  %v2790_v8 = vld [vmem:[#allocation7 + $0xc4] ss:$8 sps:$4 sm:$0xff]  }
  0xd5   :  { %1590 = vmatpush2.bf16.msra.mxu1 %v2716_v7  ;;  %1554 = vmatprep.subr.bf16.mxu0 %v2727_v10  ;;  %v2827_v7 = vld [vmem:[#allocation7 + $0x1f0] ss:$8 sps:$4 sm:$0xff]   ;;  %v2788_v10 = vld [vmem:[#allocation7 + $0xc0] ss:$8 sps:$4 sm:$0xff]  }
  0xd6   :  { %1591 = vmatprep.subr.bf16.mxu1 %v2724_v9  ;;  %v2832_v9 = vld [vmem:[#allocation7 + $0x1e4] ss:$8 sps:$4 sm:$0xff]  }
  0xd8   :  { %1555 = vmatpush2.bf16.msra.mxu0 %v2725_v13  ;;  %v2793_v13 = vld [vmem:[#allocation7 + $0xb4] ss:$8 sps:$4 sm:$0xff]  }
  0xd9   :  { %1592 = vmatpush2.bf16.msra.mxu1 %v2722_v12  ;;  %1556 = vmatprep.subr.bf16.mxu0 %v2733_v15  ;;  %v2830_v12 = vld [vmem:[#allocation7 + $0x1e0] ss:$8 sps:$4 sm:$0xff]   ;;  %v2791_v15 = vld [vmem:[#allocation7 + $0xb0] ss:$8 sps:$4 sm:$0xff]  }
  0xda   :  { %1593 = vmatprep.subr.bf16.mxu1 %v2730_v14  ;;  %v2835_v14 = vld [vmem:[#allocation7 + $0x1d4] ss:$8 sps:$4 sm:$0xff]  }
  0xdc   :  { %1557 = vmatpush2.bf16.msra.mxu0 %v2731_v18  ;;  %v2796_v18 = vld [vmem:[#allocation7 + $0xa4] ss:$8 sps:$4 sm:$0xff]  }
  0xdd   :  { %1594 = vmatpush2.bf16.msra.mxu1 %v2728_v16  ;;  %1558 = vmatprep.subr.bf16.mxu0 %v2739_v20  ;;  %v2833_v16 = vld [vmem:[#allocation7 + $0x1d0] ss:$8 sps:$4 sm:$0xff]   ;;  %v2799_v20 = vld [vmem:[#allocation7 + $0x94] ss:$8 sps:$4 sm:$0xff]  }
  0xde   :  { %1595 = vmatprep.subr.bf16.mxu1 %v2736_v19  ;;  %v2794_v19 = vld [vmem:[#allocation7 + $0xa0] ss:$8 sps:$4 sm:$0xff]  }
  0xe0   :  { %1559 = vmatpush2.bf16.msra.mxu0 %v2737_v24  ;;  %v2802_v24 = vld [vmem:[#allocation7 + $0x84] ss:$8 sps:$4 sm:$0xff]  }
  0xe1   :  { %1596 = vmatpush2.bf16.msra.mxu1 %v2734_v21  ;;  %1560 = vmatprep.subr.bf16.mxu0 %v2745_v27  ;;  %v2797_v21 = vld [vmem:[#allocation7 + $0x90] ss:$8 sps:$4 sm:$0xff]  }
  0xe2   :  { %1597 = vmatprep.subr.bf16.mxu1 %v2742_v26  ;;  %v2838_v26 = vld [vmem:[#allocation7 + $0x1c4] ss:$8 sps:$4 sm:$0xff]  }
  0xe4   :  { %1561 = vmatpush2.bf16.msra.mxu0 %v2743_v30  ;;  %v2836_v30 = vld [vmem:[#allocation7 + $0x1c0] ss:$8 sps:$4 sm:$0xff]  }
  0xe5   :  { %1598 = vmatpush2.bf16.msra.mxu1 %v2740_v29  ;;  %1626 = vmatprep.subr.bf16.mxu0 %v2751_v32 }
  0xe6   :  { %1599 = vmatprep.subr.bf16.mxu1 %v2748_v31  ;;  %v2800_v31 = vld [vmem:[#allocation7 + $0x80] ss:$8 sps:$4 sm:$0xff]  }
  0xe7   :  { %1563 = vmatmul.mubr.bf16.vlgmr.msra.gmra.mxu0 %v2998_v17  ;;  %v2761_v17 = vld [vmem:[#allocation7 + $0x50] ss:$8 sps:$4 sm:$0xff]  }
  0xe8   :  { %1627 = vmatpush1.bf16.msra.mxu0 %v2749_v34  ;;  %1644 = vmatprep.mubr.bf16.mxu0 %v2927_v25  ;;  %v2808_v25 = vld [vmem:[#allocation7 + $0x164] ss:$8 sps:$4 sm:$0xff]   ;;  %v2841_v34 = vld [vmem:[#allocation7 + $0x1b4] ss:$8 sps:$4 sm:$0xff]  }
  0xe9   :  { %1600 = vmatpush2.bf16.msra.mxu1 %v2746_v33  ;;  %2065 = vmatprep.subr.bf16.mxu0 %v2757_v36 }
  0xea   :  { %1601 = vmatprep.subr.bf16.mxu1 %v2754_v35 }
  0xed   :  { %1602 = vmatpush2.bf16.msra.mxu1 %v2752_v37  ;;  %v2839_v37 = vld [vmem:[#allocation7 + $0x1b0] ss:$8 sps:$4 sm:$0xff]  }
  0xee   :  { %2106 = vmatprep.subr.bf16.mxu1 %v2805_v45 }
  0xef   :  { %2386 = vmatmul.mubr.msk.bf16.vlgmr.msra.gmra.mxu0 %vm1321_vm0, %v3012_v28  ;;  %v2811_v28 = vld [vmem:[#allocation7 + $0x154] ss:$8 sps:$4 sm:$0xff]  }
  0xf0   :  { %1604 = vmatmul.mubr.bf16.vlgmr.msra.gmra.mxu1 %v3004_v23  ;;  %2066 = vmatpush1.bf16.msra.mxu0 %v2755_v38  ;;  %v2769_v23 = vld [vmem:[#allocation7 + $0x34] ss:$8 sps:$4 sm:$0xff]  }
  0xf1   :  { %2067 = vmatprep.subr.bf16.mxu0 %v2760_v39  ;;  %2107 = vmatpush1.bf16.msra.mxu1 %v2803_v44  ;;  %v2847_v44 = vld [vmem:[#allocation7 + $0x194] ss:$8 sps:$4 sm:$0xff]  }
  0xf2   :  { %2108 = vmatprep.subr.bf16.mxu1 %v2808_v25  ;;  %v2845_v25 = vld [vmem:[#allocation7 + $0x190] ss:$8 sps:$4 sm:$0xff]  }
  0xf4   :  { %2068 = vmatpush1.bf16.msra.mxu0 %v2758_v40  ;;  %v2844_v40 = vld [vmem:[#allocation7 + $0x1a4] ss:$8 sps:$4 sm:$0xff]  }
  0xf5   :  { %2069 = vmatprep.subr.bf16.mxu0 %v2763_v41  ;;  %2109 = vmatpush1.bf16.msra.mxu1 %v2806_v46  ;;  %v2850_v46 = vld [vmem:[#allocation7 + $0x184] ss:$8 sps:$4 sm:$0xff]  }
  0xf6   :  { %2110 = vmatprep.subr.bf16.mxu1 %v2811_v28  ;;  %v3027_v28 = vsub.s32 0, %v2977_v42 }
  0xf8   :  { %2070 = vmatpush1.bf16.msra.mxu0 %v2761_v17  ;;  %v2842_v17 = vld [vmem:[#allocation7 + $0x1a0] ss:$8 sps:$4 sm:$0xff]  }
  0xf9   :  { %2071 = vmatprep.subr.bf16.mxu0 %v2766_v43  ;;  %2111 = vmatpush1.bf16.msra.mxu1 %v2809_v48  ;;  %v3033_v48 = vsub.s32 1, %v2977_v42 }
  0xfa   :  { %2112 = vmatprep.subr.bf16.mxu1 %v2814_v49 }
  0xfc   :  { %2072 = vmatpush1.bf16.msra.mxu0 %v2764_v0 }
  0xfd   :  { %2073 = vmatprep.subr.bf16.mxu0 %v2769_v23  ;;  %2113 = vmatpush1.bf16.msra.mxu1 %v2812_v51  ;;  %v2848_v23 = vld [vmem:[#allocation7 + $0x180] ss:$8 sps:$4 sm:$0xff]  }
  0xfe   :  { %2114 = vmatprep.subr.bf16.mxu1 %v2817_v52 }
 0x100   :  { %2074 = vmatpush1.bf16.msra.mxu0 %v2767_v47  ;;  %v264_v47 = vld [vmem:[%s3057_s2] sm:$0xf] }
 0x101   :  { %2075 = vmatprep.subr.bf16.mxu0 %v2772_v11  ;;  %2115 = vmatpush1.bf16.msra.mxu1 %v2815_v54  ;;  %v269_v11 = vrot.slane %v264_v47, %v3027_v28  ;;  %v273_v49 = vrot.slane %v264_v47, %v3033_v48 }
 0x102   :  { %2116 = vmatprep.subr.bf16.mxu1 %v2820_v56 }
 0x104   :  { %2076 = vmatpush1.bf16.msra.mxu0 %v2770_v50 }
 0x105   :  { %2077 = vmatprep.subr.bf16.mxu0 %v2775_v22  ;;  %2117 = vmatpush1.bf16.msra.mxu1 %v2818_v58 }
 0x106   :  { %2118 = vmatprep.subr.bf16.mxu1 %v2823_v60 }
 0x108   :  { %2078 = vmatpush1.bf16.msra.mxu0 %v2773_v53 }
 0x109   :  { %2079 = vmatprep.subr.bf16.mxu0 %v2778_v55  ;;  %2119 = vmatpush1.bf16.msra.mxu1 %v2821_v62 }
 0x10a   :  { %2120 = vmatprep.subr.bf16.mxu1 %v2826_v1 }
 0x10c   :  { %2080 = vmatpush1.bf16.msra.mxu0 %v2776_v57 }
 0x10d   :  { %2081 = vmatprep.subr.bf16.mxu0 %v2781_v59  ;;  %2121 = vmatpush1.bf16.msra.mxu1 %v2824_v3 }
 0x10e   :  { %2122 = vmatprep.subr.bf16.mxu1 %v2829_v5 }
 0x110   :  { %2082 = vmatpush2.bf16.msra.mxu0 %v2779_v61 }
 0x111   :  { %2083 = vmatprep.subr.bf16.mxu0 %v2784_v63  ;;  %2123 = vmatpush2.bf16.msra.mxu1 %v2827_v7 }
 0x112   :  { %2124 = vmatprep.subr.bf16.mxu1 %v2832_v9  ;;  %v280_v9 = vsub.s32 3, %v2977_v42 }
 0x114   :  { %2084 = vmatpush2.bf16.msra.mxu0 %v2782_v2 }
 0x115   :  { %2085 = vmatprep.subr.bf16.mxu0 %v2787_v4  ;;  %2125 = vmatpush2.bf16.msra.mxu1 %v2830_v12 }
 0x116   :  { %2126 = vmatprep.subr.bf16.mxu1 %v2835_v14  ;;  %v281_v14 = vrot.slane %v264_v47, %v280_v9 }
 0x118   :  { %2086 = vmatpush2.bf16.msra.mxu0 %v2785_v6 }
 0x119   :  { %2087 = vmatprep.subr.bf16.mxu0 %v2790_v8  ;;  %2127 = vmatpush2.bf16.msra.mxu1 %v2833_v16  ;;  %v276_v8 = vsub.s32 2, %v2977_v42 }
 0x11a   :  { %2128 = vmatprep.subr.bf16.mxu1 %v2838_v26 }
 0x11b   :  { %v277_v12 = vrot.slane %v264_v47, %v276_v8 }
 0x11c   :  { %2088 = vmatpush2.bf16.msra.mxu0 %v2788_v10 }
 0x11d   :  { %2089 = vmatprep.subr.bf16.mxu0 %v2793_v13  ;;  %2129 = vmatpush2.bf16.msra.mxu1 %v2836_v30 }
 0x11e   :  { %2130 = vmatprep.subr.bf16.mxu1 %v2841_v34 }
 0x120   :  { %2090 = vmatpush2.bf16.msra.mxu0 %v2791_v15 }
 0x121   :  { %2091 = vmatprep.subr.bf16.mxu0 %v2796_v18  ;;  %2131 = vmatpush2.bf16.msra.mxu1 %v2839_v37 }
 0x122   :  { %2132 = vmatprep.subr.bf16.mxu1 %v2844_v40 }
 0x124   :  { %2092 = vmatpush2.bf16.msra.mxu0 %v2794_v19 }
 0x125   :  { %2093 = vmatprep.subr.bf16.mxu0 %v2799_v20  ;;  %2133 = vmatpush2.bf16.msra.mxu1 %v2842_v17 }
 0x126   :  { %2134 = vmatprep.subr.bf16.mxu1 %v2847_v44 }
 0x127   :  { %v1359_v27 = vpop.f32.mrf.mxu0 }
 0x128   :  { %v1400_v29 = vpop.f32.mrf.mxu1  ;;  %2094 = vmatpush2.bf16.msra.mxu0 %v2797_v21  ;;  %v1360_v50 = vadd.f32 %v1359_v27, %v269_v11  ;;  %v2153_v11 = vld [vmem:[%s3060_s5] sm:$0x3] }
 0x129   :  { %v1361_v32 = vpop.f32.mrf.mxu0  ;;  %2095 = vmatprep.subr.bf16.mxu0 %v2802_v24  ;;  %2135 = vmatpush2.bf16.msra.mxu1 %v2845_v25 }
 0x12a   :  { %v1402_v33 = vpop.f32.mrf.mxu1  ;;  %2136 = vmatprep.subr.bf16.mxu1 %v2850_v46  ;;  %v1362_v51 = vadd.f32 %v1361_v32, %v273_v49  ;;  %v1401_v22 = vadd.f32 %v1400_v29, %v1360_v50 }
 0x12b   :  { %v1363_v35 = vpop.f32.mrf.mxu0 }
 0x12c   :  { %v1404_v36 = vpop.f32.mrf.mxu1  ;;  %2096 = vmatpush2.bf16.msra.mxu0 %v2800_v31  ;;  %v1403_v53 = vadd.f32 %v1402_v33, %v1362_v51 }
 0x12d   :  { %v1364_v38 = vpop.f32.mrf.mxu0  ;;  %2137 = vmatpush2.bf16.msra.mxu1 %v2848_v23 }
 0x12e   :  { %v1405_v39 = vpop.f32.mrf.mxu1 }
 0x130   :  { %v1482_v41 = vpop.f32.mrf.mxu1 }
 0x132   :  { %v1484_v43 = vpop.f32.mrf.mxu1 }
 0x134   :  { %v1486_v45 = vpop.f32.mrf.mxu1 }
 0x136   :  { %v1487_v0 = vpop.f32.mrf.mxu1 }
 0x137   :  { %v1733_v0 = vld [vmem:[%s3059_s4] sm:$0x3] }
 0x138   :  { %v1738_v46 = vrot.slane %v1733_v0, %v3027_v28  ;;  %v1742_v23 = vrot.slane %v1733_v0, %v3033_v48 }
 0x167   :  { %v1441_v52 = vpop.f32.mrf.mxu0 }
 0x168   :  { %v1442_v54 = vadd.f32 %v1441_v52, %v1401_v22  ;;  %v2158_v52 = vrot.slane %v2153_v11, %v3027_v28  ;;  %v2174_v28 = vstv %s3061_s6 }
 0x169   :  { %v1443_v55 = vpop.f32.mrf.mxu0 }
 0x16a   :  { %v1483_v56 = vadd.f32 %v1482_v41, %v1442_v54  ;;  %v1444_v57 = vadd.f32 %v1443_v55, %v1403_v53 }
 0x16b   :  { %v1445_v58 = vpop.f32.mrf.mxu0 }
 0x16c   :  { %vm1653_vm1 = vcmp.gt.f32.partialorder %v1483_v56, 0.0  ;;  %v1657_v59 = vmul.f32 0.2, %v1483_v56  ;;  %v1485_v60 = vadd.f32 %v1484_v43, %v1444_v57 }
 0x16d   :  { %v1446_v61 = vpop.f32.mrf.mxu0 }
 0x16e   :  { %v1658_v62 = vmul.f32 0.2, %v1485_v60  ;;  %vm1654_vm2 = vcmp.gt.f32.partialorder %v1485_v60, 0.0  ;;  %v1661_v63 = vsel %vm1653_vm1, %v1483_v56, %v1657_v59  ;;  %v2162_v56 = vrot.slane %v2153_v11, %v3033_v48 }
 0x16f   :  { %v1665_v5 = vpack.c.bf16 %v1661_v63, %v1661_v63 }
 0x170   :  { %v1523_v1 = vpop.f32.mrf.mxu1  ;;  %v1662_v2 = vsel %vm1654_vm2, %v1485_v60, %v1658_v62 }
 0x171   :  { %v1666_v4 = vpack.c.bf16 %v1662_v2, %v1662_v2  ;;  %v1524_v16 = vadd.f32 %v1523_v1, %v277_v12 }
 0x172   :  { %v1525_v3 = vpop.f32.mrf.mxu1 }
 0x173   :  { %2097 = vmatprep.mubr.bf16.mxu0 %v1666_v4  ;;  %v1526_v19 = vadd.f32 %v1525_v3, %v281_v14 }
 0x174   :  { %v1527_v6 = vpop.f32.mrf.mxu1  ;;  %2098 = vmatmul.mubr.bf16.vlgmr.msra.gmra.mxu0 %v1665_v5 }
 0x176   :  { %v1528_v7 = vpop.f32.mrf.mxu1 }
 0x1a7   :  { %v1564_v10 = vpop.f32.mrf.mxu0 }
 0x1a8   :  { %v1565_v20 = vadd.f32 %v1564_v10, %v1524_v16 }
 0x1a9   :  { %v1566_v13 = vpop.f32.mrf.mxu0 }
 0x1aa   :  { %v1567_v26 = vadd.f32 %v1566_v13, %v1526_v19 }
 0x1ab   :  { %v1568_v15 = vpop.f32.mrf.mxu0 }
 0x1ad   :  { %v1569_v18 = vpop.f32.mrf.mxu0 }
 0x1af   :  { %v1646_v24 = vpop.f32.mrf.mxu0 }
 0x1b0   :  { %v1605_v21 = vpop.f32.mrf.mxu1 }
 0x1b1   :  { %v1606_v27 = vadd.f32 %v1605_v21, %v1565_v20  ;;  %v1648_v30 = vpop.f32.mrf.mxu0 }
 0x1b2   :  { %v1607_v29 = vpop.f32.mrf.mxu1 }
 0x1b3   :  { %v1647_v31 = vadd.f32 %v1646_v24, %v1606_v27  ;;  %v1608_v32 = vadd.f32 %v1607_v29, %v1567_v26  ;;  %v1650_v34 = vpop.f32.mrf.mxu0 }
 0x1b4   :  { %v1609_v33 = vpop.f32.mrf.mxu1 }
 0x1b5   :  { %vm1655_vm3 = vcmp.gt.f32.partialorder %v1647_v31, 0.0  ;;  %v1659_v42 = vmul.f32 0.2, %v1647_v31  ;;  %v1649_v35 = vadd.f32 %v1648_v30, %v1608_v32  ;;  %v1651_v37 = vpop.f32.mrf.mxu0 }
 0x1b6   :  { %v1610_v36 = vpop.f32.mrf.mxu1 }
 0x1b7   :  { %vm1656_vm4 = vcmp.gt.f32.partialorder %v1649_v35, 0.0  ;;  %v1660_v38 = vmul.f32 0.2, %v1649_v35  ;;  %v1663_v39 = vsel %vm1655_vm3, %v1647_v31, %v1659_v42 }
 0x1b8   :  { %v1667_v17 = vpack.c.bf16 %v1663_v39, %v1663_v39 }
 0x1b9   :  { %v1664_v40 = vsel %vm1656_vm4, %v1649_v35, %v1660_v38 }
 0x1ba   :  { %v1668_v41 = vpack.c.bf16 %v1664_v40, %v1664_v40 }
 0x1bc   :  { %2138 = vmatprep.mubr.bf16.mxu1 %v1668_v41 }
 0x1bd   :  { %2139 = vmatmul.mubr.bf16.vlgmr.msra.gmra.mxu1 %v1667_v17 }
 0x234   :  { %v2099_v43 = vpop.f32.mrf.mxu0 }
 0x235   :  { %v2100_v47 = vadd.f32 %v2099_v43, %v1738_v46 }
 0x236   :  { %v2101_v44 = vpop.f32.mrf.mxu0 }
 0x237   :  { %v2102_v50 = vadd.f32 %v2101_v44, %v1742_v23 }
 0x238   :  { %v2103_v45 = vpop.f32.mrf.mxu0 }
 0x23a   :  { %v2104_v25 = vpop.f32.mrf.mxu0 }
 0x27d   :  { %v2140_v49 = vpop.f32.mrf.mxu1 }
 0x27e   :  { %v2141_v51 = vadd.f32 %v2140_v49, %v2100_v47 }
 0x27f   :  { %v2142_v22 = vpop.f32.mrf.mxu1 }
 0x280   :  { %vm2147_vm5 = vcmp.gt.f32.partialorder %v2141_v51, 0.0  ;;  %v2149_v53 = vmul.f32 0.2, %v2141_v51  ;;  %v2143_v54 = vadd.f32 %v2142_v22, %v2102_v50 }
 0x281   :  { %v2144_v55 = vpop.f32.mrf.mxu1 }
 0x282   :  { %vm2148_vm6 = vcmp.gt.f32.partialorder %v2143_v54, 0.0  ;;  %v2150_v57 = vmul.f32 0.2, %v2143_v54  ;;  %v2151_v58 = vsel %vm2147_vm5, %v2141_v51, %v2149_v53 }
 0x283   :  { %v2145_v59 = vpop.f32.mrf.mxu1  ;;  %v2165_v60 = vmul.f32 %v2158_v52, %v2151_v58 }
 0x284   :  { %v2152_v61 = vsel %vm2148_vm6, %v2143_v54, %v2150_v57 }
 0x285   :  { %v2166_v62 = vmul.f32 %v2162_v56, %v2152_v61  ;;  %v2168_v63 = vsel %vm2167_vm7, %v2165_v60, 0.0 }
 0x287   :  { %v2169_v1 = vsel %vm2167_vm7, %v2166_v62, 0.0 }
 0x288   :  { %v2170_v2 = vadd.f32 %v2169_v1, %v2168_v63 }
 0x28a   :  { %2171 = vadd.xlane.f32.xlu0 %v2170_v2 }
 0x313   :  { %v2172_v3 = vpop.xlane.xlu0 %2171 }
 0x314   :  { %v2175_v4 = vadd.f32 %v2174_v28, %v2172_v3 }
 0x316   :  { %v2176_v5 = vsub.f32 0.0, %v2175_v4 }
 0x318   :  { %v2177_v48 = vmul.f32 1.442695, %v2176_v5 }
 0x31a   :  { %2851 = vpow2.f32 %v2177_v48 }
 0x327   :  { %v2852_v6 = vpop.eup %2851 }
 0x328   :  { %v2179_v7 = vadd.f32 1.0, %v2852_v6 }
 0x32a   :  { %2853 = vrcp.f32 %v2179_v7 }
 0x337   :  { %v2854_v8 = vpop.eup %2853 }
 0x338   :  { %2182 = vst.msk [vmem:[%s3062_s7] sm:$0x3] %vm2181_vm8, %v2854_v8 }
 0x339   :  { %2187 = vsyncpa [#allocation4], 1 }
 0x33a   :  { %2188 = vsyncpa [#allocation6], 1 }

</bundles_post_ra>
